<compile_context>
chip_gen: v5e
topology: v5e:2x2
jax: 0.10.0
libtpu: 0.0.40
codegen_flags: <defaults>
</compile_context>

<pallas_src>
import functools

import jax
import jax.numpy as jnp
from jax.experimental import pallas as pl
from jax.experimental.pallas import tpu as pltpu


def _round_up(x, m):
    return ((x + m - 1) // m) * m


# Abramowitz & Stegun 7.1.26 erf constants (|err| < 1.5e-7), with the GELU
# 1/sqrt(2) argument scaling folded into `p` to save a multiply per element.
_INV_SQRT2 = 0.7071067811865476
_A1, _A2, _A3, _A4, _A5 = (0.254829592, -0.284496736, 1.421413741,
                           -1.453152027, 1.061405429)
_P_OVER_SQRT2 = 0.3275911 * _INV_SQRT2


def _gelu_exact_f32(h):
    """Exact (erf-based) GELU matching nn.GELU() default, all-f32 VPU/EUP math.

    Uses 0.5*h*(1 + erf(h/sqrt2)) == 0.5*(h + |h| * erf(|h|/sqrt2)), which removes
    the sign-select; the reciprocal is pushed to the EUP slot (approx mode).
    """
    ah = jnp.abs(h)
    t = pl.reciprocal(1.0 + _P_OVER_SQRT2 * ah, approx=True)
    poly = ((((_A5 * t + _A4) * t + _A3) * t + _A2) * t + _A1) * t
    erf_abs = 1.0 - poly * jnp.exp(-0.5 * h * h)
    return 0.5 * (h + ah * erf_abs)


def ffn_kernel(x_ref, w1_ref, b1_ref, w2_ref, b2_ref, o_ref):
    # x_ref : (tm, D) bf16   w1_ref: (D, H) bf16   b1_ref: (1, H) f32
    # w2_ref: (H, D) bf16    b2_ref: (1, D) f32    o_ref : (tm, D) f32
    # Linear1 on the MXU: bf16 inputs, f32 accumulation.
    h = jnp.dot(x_ref[...], w1_ref[...], preferred_element_type=jnp.float32)
    h = h + b1_ref[...]                       # f32 bias, broadcast (1, H)

    # Exact GELU in f32 (eval-mode dropout is the identity).
    g = _gelu_exact_f32(h)

    # Linear2 on the MXU: cast activations to the bf16 weight dtype, f32 accumulation.
    y = jnp.dot(g.astype(w2_ref.dtype), w2_ref[...],
                preferred_element_type=jnp.float32)
    o_ref[...] = (y + b2_ref[...]).astype(o_ref.dtype)   # lane-dense full-width store


def _vmem_limit_bytes():
    # ~80% of physical VMEM, capped at 100 MiB:
    #   v7x (64 MiB/TC)  -> ~51 MiB,   v5e/v6e (128 MiB) -> 100 MiB.
    try:
        cap = getattr(pltpu.get_tpu_info(), "vmem_capacity_bytes", 128 * 1024 * 1024)
    except Exception:  # non-TPU / interpret fallback
        cap = 128 * 1024 * 1024
    return int(min(cap * 0.8, 100 * 1024 * 1024))


def _choose_row_tile(M, block_rows):
    if M >= 256:
        # Multiple of 128 (full MXU M-occupancy, unmasked stores) and capped so the
        # row grid has >= 2 steps for megacore sharding on v7x.
        return max(128, min(block_rows, _round_up(pl.cdiv(M, 2), 128)))
    if M > 8:
        # Tiny M (e.g. the unit test): two sublane-aligned tiles so both v7x TCs get
        # work; the extra ~0.35us grid step is negligible on v5e/v6e.
        return _round_up(pl.cdiv(M, 2), 8)
    return _round_up(max(M, 1), 8)


def _resident_spec(shape, single_buffer):
    # Constant index_map => operand stays resident in VMEM across the whole grid.
    index_map = lambda i: (0,) * len(shape)
    if single_buffer:
        # Nothing to pipeline for a constant block: 1 buffer halves its VMEM cost.
        return pl.BlockSpec(shape, index_map, pipeline_mode=pl.Buffered(1))
    return pl.BlockSpec(shape, index_map)


@functools.partial(jax.jit, static_argnames=("block_rows", "single_buffer_weights"))
def feed_forward_block(x, w1, b1, w2, b2, *, block_rows=512,
                       single_buffer_weights=True):
    """Eval-mode forward of FeedForwardBlock.

    x : (B, T, D)          input (float32)
    w1: (H, D), b1: (H,)   Linear(dim, abstract_dim)   -- PyTorch layout
    w2: (D, H), b2: (D,)   Linear(abstract_dim, dim)   -- PyTorch layout
    returns (B, T, D) float32
    """
    B, T, D = x.shape
    H = w1.shape[0]
    M = B * T

    # Flatten rows at the JAX level; transpose + bf16-cast weights once so the MXU is
    # fed bf16 directly (f32 accumulation and f32 bias/GELU math happen in-kernel).
    x2 = x.reshape(M, D).astype(jnp.bfloat16)
    w1t = w1.T.astype(jnp.bfloat16)                 # (D, H)
    w2t = w2.T.astype(jnp.bfloat16)                 # (H, D)
    b1r = b1.reshape(1, H).astype(jnp.float32)
    b2r = b2.reshape(1, D).astype(jnp.float32)

    tm = _choose_row_tile(M, block_rows)
    Mp = _round_up(M, tm)
    if Mp != M:
        x2 = jnp.pad(x2, ((0, Mp - M), (0, 0)))
    grid = (Mp // tm,)

    out = pl.pallas_call(
        ffn_kernel,
        out_shape=jax.ShapeDtypeStruct((Mp, D), x.dtype),
        grid_spec=pltpu.PrefetchScalarGridSpec(
            num_scalar_prefetch=0,
            grid=grid,
            in_specs=[
                pl.BlockSpec((tm, D), lambda i: (i, 0)),       # x row tile (pipelined)
                _resident_spec((D, H), single_buffer_weights),  # W1^T
                _resident_spec((1, H), single_buffer_weights),  # b1
                _resident_spec((H, D), single_buffer_weights),  # W2^T
                _resident_spec((1, D), single_buffer_weights),  # b2
            ],
            out_specs=pl.BlockSpec((tm, D), lambda i: (i, 0)),
        ),
        compiler_params=pltpu.CompilerParams(
            dimension_semantics=("parallel",),    # shard row tiles across TCs (v7x)
            vmem_limit_bytes=_vmem_limit_bytes(),
        ),
    )(x2, w1t, b1r, w2t, b2r)

    return out[:M].reshape(B, T, D)


if __name__ == "__main__":
    # Module config: dim=128, abstraction_coef=2.0 -> abstract_dim=256, dropout=0.1 (eval).
    B, T, D = 2, 16, 128
    H = int(D * 2.0)

    key = jax.random.PRNGKey(0)
    k1, k2, k3, k4, k5 = jax.random.split(key, 5)
    x = jax.random.normal(k1, (B, T, D), dtype=jnp.float32)
    w1 = jax.random.normal(k2, (H, D), dtype=jnp.float32) * (1.0 / jnp.sqrt(D))
    b1 = jax.random.normal(k3, (H,), dtype=jnp.float32) * 0.05
    w2 = jax.random.normal(k4, (D, H), dtype=jnp.float32) * (1.0 / jnp.sqrt(H))
    b2 = jax.random.normal(k5, (D,), dtype=jnp.float32) * 0.05

    try:
        out = jax.block_until_ready(feed_forward_block(x, w1, b1, w2, b2))
    except Exception:
        # Fallback if this build rejects pl.Buffered(1) on resident operands.
        out = jax.block_until_ready(
            feed_forward_block(x, w1, b1, w2, b2, single_buffer_weights=False))

    assert out.shape == (B, T, D), out.shape

    # Reference 1: identical bf16 MXU-input rounding, f32 accumulation, exact GELU.
    xb = x.reshape(-1, D).astype(jnp.bfloat16)
    w1b, w2b = w1.T.astype(jnp.bfloat16), w2.T.astype(jnp.bfloat16)
    h_ref = jnp.dot(xb, w1b, preferred_element_type=jnp.float32) + b1
    g_ref = jax.nn.gelu(h_ref, approximate=False)
    ref_bf16 = (jnp.dot(g_ref.astype(jnp.bfloat16), w2b,
                        preferred_element_type=jnp.float32) + b2).reshape(B, T, D)

    # Reference 2: pure-f32 PyTorch semantics (sanity check, bf16-rounding tolerance).
    h32 = x @ w1.T + b1
    ref_f32 = jax.nn.gelu(h32, approximate=False) @ w2.T + b2

    err_matched = float(jnp.max(jnp.abs(out - ref_bf16)))
    err_f32 = float(jnp.max(jnp.abs(out - ref_f32)))
    assert jnp.allclose(out, ref_bf16, atol=2e-2, rtol=2e-2), err_matched
    assert jnp.allclose(out, ref_f32, atol=5e-2, rtol=5e-2), err_f32
    print("KERNEL_OK")
</pallas_src>

<mosaic_0001>
module attributes {stable_mosaic.version = 11 : i64} {
  func.func @ffn_kernel(%arg0: i32, %arg1: memref<16x128xbf16, #tpu.memory_space<vmem>>, %arg2: memref<128x256xbf16, #tpu.memory_space<vmem>>, %arg3: memref<1x256xf32, #tpu.memory_space<vmem>>, %arg4: memref<256x128xbf16, #tpu.memory_space<vmem>>, %arg5: memref<1x128xf32, #tpu.memory_space<vmem>>, %arg6: memref<16x128xf32, #tpu.memory_space<vmem>>) attributes {dimension_semantics = [#tpu.dimension_semantics<parallel>], iteration_bounds = array<i64: 2>, scalar_prefetch = 0 : i64, scratch_operands = 0 : i64, tpu.core_type = #tpu.core_type<tc>, window_params = [{transform_indices = @transform_0, window_bounds = array<i64: 16, 128>}, {pipeline_mode = #tpu.pipeline_mode<synchronous>, transform_indices = @transform_1, window_bounds = array<i64: 128, 256>}, {pipeline_mode = #tpu.pipeline_mode<synchronous>, transform_indices = @transform_2, window_bounds = array<i64: 1, 256>}, {pipeline_mode = #tpu.pipeline_mode<synchronous>, transform_indices = @transform_3, window_bounds = array<i64: 256, 128>}, {pipeline_mode = #tpu.pipeline_mode<synchronous>, transform_indices = @transform_4, window_bounds = array<i64: 1, 128>}, {transform_indices = @transform_5, window_bounds = array<i64: 16, 128>}]} {
    %c0 = arith.constant 0 : index
    %c0_0 = arith.constant 0 : index
    %0 = vector.load %arg1[%c0, %c0_0] : memref<16x128xbf16, #tpu.memory_space<vmem>>, vector<16x128xbf16>
    %c0_1 = arith.constant 0 : index
    %c0_2 = arith.constant 0 : index
    %1 = vector.load %arg2[%c0_1, %c0_2] : memref<128x256xbf16, #tpu.memory_space<vmem>>, vector<128x256xbf16>
    %cst = arith.constant dense<0.000000e+00> : vector<16x256xf32>
    %2 = tpu.matmul %0, %1, %cst {dimension_numbers = #tpu.dot_dimension_numbers<[1], [0], [0], [1], [0, 0, 1, 1], [], []>} : vector<16x128xbf16>, vector<128x256xbf16>, vector<16x256xf32> -> vector<16x256xf32>
    %c0_3 = arith.constant 0 : index
    %c0_4 = arith.constant 0 : index
    %3 = vector.load %arg3[%c0_3, %c0_4] : memref<1x256xf32, #tpu.memory_space<vmem>>, vector<1x256xf32>
    %4 = vector.broadcast %3 : vector<1x256xf32> to vector<16x256xf32>
    %5 = arith.addf %2, %4 : vector<16x256xf32>
    %6 = math.absf %5 : vector<16x256xf32>
    %cst_5 = arith.constant 0.231641889 : f32
    %7 = vector.broadcast %cst_5 : f32 to vector<16x256xf32>
    %8 = arith.mulf %7, %6 : vector<16x256xf32>
    %cst_6 = arith.constant 1.000000e+00 : f32
    %9 = vector.broadcast %cst_6 : f32 to vector<16x256xf32>
    %10 = arith.addf %9, %8 : vector<16x256xf32>
    %11 = tpu.reciprocal %10 {approx = true} : vector<16x256xf32> -> vector<16x256xf32>
    %cst_7 = arith.constant 1.06140542 : f32
    %12 = vector.broadcast %cst_7 : f32 to vector<16x256xf32>
    %13 = arith.mulf %12, %11 : vector<16x256xf32>
    %cst_8 = arith.constant -1.45315206 : f32
    %14 = vector.broadcast %cst_8 : f32 to vector<16x256xf32>
    %15 = arith.addf %13, %14 : vector<16x256xf32>
    %16 = arith.mulf %15, %11 : vector<16x256xf32>
    %cst_9 = arith.constant 1.42141378 : f32
    %17 = vector.broadcast %cst_9 : f32 to vector<16x256xf32>
    %18 = arith.addf %16, %17 : vector<16x256xf32>
    %19 = arith.mulf %18, %11 : vector<16x256xf32>
    %cst_10 = arith.constant -0.284496725 : f32
    %20 = vector.broadcast %cst_10 : f32 to vector<16x256xf32>
    %21 = arith.addf %19, %20 : vector<16x256xf32>
    %22 = arith.mulf %21, %11 : vector<16x256xf32>
    %cst_11 = arith.constant 0.254829586 : f32
    %23 = vector.broadcast %cst_11 : f32 to vector<16x256xf32>
    %24 = arith.addf %22, %23 : vector<16x256xf32>
    %25 = arith.mulf %24, %11 : vector<16x256xf32>
    %cst_12 = arith.constant -5.000000e-01 : f32
    %26 = vector.broadcast %cst_12 : f32 to vector<16x256xf32>
    %27 = arith.mulf %26, %5 : vector<16x256xf32>
    %28 = arith.mulf %27, %5 : vector<16x256xf32>
    %29 = math.exp %28 : vector<16x256xf32>
    %30 = arith.mulf %25, %29 : vector<16x256xf32>
    %cst_13 = arith.constant 1.000000e+00 : f32
    %31 = vector.broadcast %cst_13 : f32 to vector<16x256xf32>
    %32 = arith.subf %31, %30 : vector<16x256xf32>
    %33 = arith.mulf %6, %32 : vector<16x256xf32>
    %34 = arith.addf %5, %33 : vector<16x256xf32>
    %cst_14 = arith.constant 5.000000e-01 : f32
    %35 = vector.broadcast %cst_14 : f32 to vector<16x256xf32>
    %36 = arith.mulf %35, %34 : vector<16x256xf32>
    %37 = arith.truncf %36 : vector<16x256xf32> to vector<16x256xbf16>
    %c0_15 = arith.constant 0 : index
    %c0_16 = arith.constant 0 : index
    %38 = vector.load %arg4[%c0_15, %c0_16] : memref<256x128xbf16, #tpu.memory_space<vmem>>, vector<256x128xbf16>
    %cst_17 = arith.constant dense<0.000000e+00> : vector<16x128xf32>
    %39 = tpu.matmul %37, %38, %cst_17 {dimension_numbers = #tpu.dot_dimension_numbers<[1], [0], [0], [1], [0, 0, 1, 1], [], []>} : vector<16x256xbf16>, vector<256x128xbf16>, vector<16x128xf32> -> vector<16x128xf32>
    %c0_18 = arith.constant 0 : index
    %c0_19 = arith.constant 0 : index
    %40 = vector.load %arg5[%c0_18, %c0_19] : memref<1x128xf32, #tpu.memory_space<vmem>>, vector<1x128xf32>
    %41 = vector.broadcast %40 : vector<1x128xf32> to vector<16x128xf32>
    %42 = arith.addf %39, %41 : vector<16x128xf32>
    %c0_20 = arith.constant 0 : index
    %c0_21 = arith.constant 0 : index
    %43 = vector.load %arg6[%c0_20, %c0_21] : memref<16x128xf32, #tpu.memory_space<vmem>>, vector<16x128xf32>
    tpu.vector_store %arg6[%c0_20, %c0_21], %42 {strides = array<i32>} : memref<16x128xf32, #tpu.memory_space<vmem>>, vector<16x128xf32>,
    return
  }
  func.func @transform_0(%arg0: i32) -> (i32, i32) {
    %c0_i32 = arith.constant 0 : i32
    %c0_i32_0 = arith.constant 0 : i32
    return %arg0, %c0_i32 : i32, i32
  }
  func.func @transform_1(%arg0: i32) -> (i32, i32) {
    %c0_i32 = arith.constant 0 : i32
    %c0_i32_0 = arith.constant 0 : i32
    %c0_i32_1 = arith.constant 0 : i32
    return %c0_i32, %c0_i32_0 : i32, i32
  }
  func.func @transform_2(%arg0: i32) -> (i32, i32) {
    %c0_i32 = arith.constant 0 : i32
    %c0_i32_0 = arith.constant 0 : i32
    %c0_i32_1 = arith.constant 0 : i32
    return %c0_i32, %c0_i32_0 : i32, i32
  }
  func.func @transform_3(%arg0: i32) -> (i32, i32) {
    %c0_i32 = arith.constant 0 : i32
    %c0_i32_0 = arith.constant 0 : i32
    %c0_i32_1 = arith.constant 0 : i32
    return %c0_i32, %c0_i32_0 : i32, i32
  }
  func.func @transform_4(%arg0: i32) -> (i32, i32) {
    %c0_i32 = arith.constant 0 : i32
    %c0_i32_0 = arith.constant 0 : i32
    %c0_i32_1 = arith.constant 0 : i32
    return %c0_i32, %c0_i32_0 : i32, i32
  }
  func.func @transform_5(%arg0: i32) -> (i32, i32) {
    %c0_i32 = arith.constant 0 : i32
    %c0_i32_0 = arith.constant 0 : i32
    return %arg0, %c0_i32 : i32, i32
  }
}

module attributes {stable_mosaic.version = 11 : i64} {
  func.func @ffn_kernel(%arg0: i32, %arg1: memref<16x128xbf16, #tpu.memory_space<vmem>>, %arg2: memref<128x256xbf16, #tpu.memory_space<vmem>>, %arg3: memref<1x256xf32, #tpu.memory_space<vmem>>, %arg4: memref<256x128xbf16, #tpu.memory_space<vmem>>, %arg5: memref<1x128xf32, #tpu.memory_space<vmem>>, %arg6: memref<16x128xf32, #tpu.memory_space<vmem>>) attributes {dimension_semantics = [#tpu.dimension_semantics<parallel>], iteration_bounds = array<i64: 2>, scalar_prefetch = 0 : i64, scratch_operands = 0 : i64, tpu.core_type = #tpu.core_type<tc>, window_params = [{transform_indices = @transform_0, window_bounds = array<i64: 16, 128>}, {pipeline_mode = #tpu.pipeline_mode<synchronous>, transform_indices = @transform_1, window_bounds = array<i64: 128, 256>}, {pipeline_mode = #tpu.pipeline_mode<synchronous>, transform_indices = @transform_2, window_bounds = array<i64: 1, 256>}, {pipeline_mode = #tpu.pipeline_mode<synchronous>, transform_indices = @transform_3, window_bounds = array<i64: 256, 128>}, {pipeline_mode = #tpu.pipeline_mode<synchronous>, transform_indices = @transform_4, window_bounds = array<i64: 1, 128>}, {transform_indices = @transform_5, window_bounds = array<i64: 16, 128>}]} {
    %c0 = arith.constant 0 : index
    %c0_0 = arith.constant 0 : index
    %0 = vector.load %arg1[%c0, %c0_0] : memref<16x128xbf16, #tpu.memory_space<vmem>>, vector<16x128xbf16>
    %c0_1 = arith.constant 0 : index
    %c0_2 = arith.constant 0 : index
    %1 = vector.load %arg2[%c0_1, %c0_2] : memref<128x256xbf16, #tpu.memory_space<vmem>>, vector<128x256xbf16>
    %cst = arith.constant dense<0.000000e+00> : vector<16x256xf32>
    %2 = tpu.matmul %0, %1, %cst {dimension_numbers = #tpu.dot_dimension_numbers<[1], [0], [0], [1], [0, 0, 1, 1], [], []>} : vector<16x128xbf16>, vector<128x256xbf16>, vector<16x256xf32> -> vector<16x256xf32>
    %c0_3 = arith.constant 0 : index
    %c0_4 = arith.constant 0 : index
    %3 = vector.load %arg3[%c0_3, %c0_4] : memref<1x256xf32, #tpu.memory_space<vmem>>, vector<1x256xf32>
    %4 = vector.broadcast %3 : vector<1x256xf32> to vector<16x256xf32>
    %5 = arith.addf %2, %4 : vector<16x256xf32>
    %6 = math.absf %5 : vector<16x256xf32>
    %cst_5 = arith.constant 0.231641889 : f32
    %7 = vector.broadcast %cst_5 : f32 to vector<16x256xf32>
    %8 = arith.mulf %7, %6 : vector<16x256xf32>
    %cst_6 = arith.constant 1.000000e+00 : f32
    %9 = vector.broadcast %cst_6 : f32 to vector<16x256xf32>
    %10 = arith.addf %9, %8 : vector<16x256xf32>
    %11 = tpu.reciprocal %10 {approx = true} : vector<16x256xf32> -> vector<16x256xf32>
    %cst_7 = arith.constant 1.06140542 : f32
    %12 = vector.broadcast %cst_7 : f32 to vector<16x256xf32>
    %13 = arith.mulf %12, %11 : vector<16x256xf32>
    %cst_8 = arith.constant -1.45315206 : f32
    %14 = vector.broadcast %cst_8 : f32 to vector<16x256xf32>
    %15 = arith.addf %13, %14 : vector<16x256xf32>
    %16 = arith.mulf %15, %11 : vector<16x256xf32>
    %cst_9 = arith.constant 1.42141378 : f32
    %17 = vector.broadcast %cst_9 : f32 to vector<16x256xf32>
    %18 = arith.addf %16, %17 : vector<16x256xf32>
    %19 = arith.mulf %18, %11 : vector<16x256xf32>
    %cst_10 = arith.constant -0.284496725 : f32
    %20 = vector.broadcast %cst_10 : f32 to vector<16x256xf32>
    %21 = arith.addf %19, %20 : vector<16x256xf32>
    %22 = arith.mulf %21, %11 : vector<16x256xf32>
    %cst_11 = arith.constant 0.254829586 : f32
    %23 = vector.broadcast %cst_11 : f32 to vector<16x256xf32>
    %24 = arith.addf %22, %23 : vector<16x256xf32>
    %25 = arith.mulf %24, %11 : vector<16x256xf32>
    %cst_12 = arith.constant -5.000000e-01 : f32
    %26 = vector.broadcast %cst_12 : f32 to vector<16x256xf32>
    %27 = arith.mulf %26, %5 : vector<16x256xf32>
    %28 = arith.mulf %27, %5 : vector<16x256xf32>
    %29 = math.exp %28 : vector<16x256xf32>
    %30 = arith.mulf %25, %29 : vector<16x256xf32>
    %cst_13 = arith.constant 1.000000e+00 : f32
    %31 = vector.broadcast %cst_13 : f32 to vector<16x256xf32>
    %32 = arith.subf %31, %30 : vector<16x256xf32>
    %33 = arith.mulf %6, %32 : vector<16x256xf32>
    %34 = arith.addf %5, %33 : vector<16x256xf32>
    %cst_14 = arith.constant 5.000000e-01 : f32
    %35 = vector.broadcast %cst_14 : f32 to vector<16x256xf32>
    %36 = arith.mulf %35, %34 : vector<16x256xf32>
    %37 = arith.truncf %36 : vector<16x256xf32> to vector<16x256xbf16>
    %c0_15 = arith.constant 0 : index
    %c0_16 = arith.constant 0 : index
    %38 = vector.load %arg4[%c0_15, %c0_16] : memref<256x128xbf16, #tpu.memory_space<vmem>>, vector<256x128xbf16>
    %cst_17 = arith.constant dense<0.000000e+00> : vector<16x128xf32>
    %39 = tpu.matmul %37, %38, %cst_17 {dimension_numbers = #tpu.dot_dimension_numbers<[1], [0], [0], [1], [0, 0, 1, 1], [], []>} : vector<16x256xbf16>, vector<256x128xbf16>, vector<16x128xf32> -> vector<16x128xf32>
    %c0_18 = arith.constant 0 : index
    %c0_19 = arith.constant 0 : index
    %40 = vector.load %arg5[%c0_18, %c0_19] : memref<1x128xf32, #tpu.memory_space<vmem>>, vector<1x128xf32>
    %41 = vector.broadcast %40 : vector<1x128xf32> to vector<16x128xf32>
    %42 = arith.addf %39, %41 : vector<16x128xf32>
    %c0_20 = arith.constant 0 : index
    %c0_21 = arith.constant 0 : index
    %43 = vector.load %arg6[%c0_20, %c0_21] : memref<16x128xf32, #tpu.memory_space<vmem>>, vector<16x128xf32>
    tpu.vector_store %arg6[%c0_20, %c0_21], %42 {strides = array<i32>} : memref<16x128xf32, #tpu.memory_space<vmem>>, vector<16x128xf32>,
    return
  }
  func.func @transform_0(%arg0: i32) -> (i32, i32) {
    %c0_i32 = arith.constant 0 : i32
    %c0_i32_0 = arith.constant 0 : i32
    return %arg0, %c0_i32 : i32, i32
  }
  func.func @transform_1(%arg0: i32) -> (i32, i32) {
    %c0_i32 = arith.constant 0 : i32
    %c0_i32_0 = arith.constant 0 : i32
    %c0_i32_1 = arith.constant 0 : i32
    return %c0_i32, %c0_i32_0 : i32, i32
  }
  func.func @transform_2(%arg0: i32) -> (i32, i32) {
    %c0_i32 = arith.constant 0 : i32
    %c0_i32_0 = arith.constant 0 : i32
    %c0_i32_1 = arith.constant 0 : i32
    return %c0_i32, %c0_i32_0 : i32, i32
  }
  func.func @transform_3(%arg0: i32) -> (i32, i32) {
    %c0_i32 = arith.constant 0 : i32
    %c0_i32_0 = arith.constant 0 : i32
    %c0_i32_1 = arith.constant 0 : i32
    return %c0_i32, %c0_i32_0 : i32, i32
  }
  func.func @transform_4(%arg0: i32) -> (i32, i32) {
    %c0_i32 = arith.constant 0 : i32
    %c0_i32_0 = arith.constant 0 : i32
    %c0_i32_1 = arith.constant 0 : i32
    return %c0_i32, %c0_i32_0 : i32, i32
  }
  func.func @transform_5(%arg0: i32) -> (i32, i32) {
    %c0_i32 = arith.constant 0 : i32
    %c0_i32_0 = arith.constant 0 : i32
    return %arg0, %c0_i32 : i32, i32
  }
}

</mosaic_0001>

<bundles_post_ra>
// kernel: feed_forward_block.1
= control target key start
LH: loop header
LB: loop body
LE: loop exit
PB: predicated region body
PF: predicated region fallthrough
CT: control target
= control target key end

     0   :  { %10 = vsyncpa [#allocation3], 0  ;;  %s1300_s0 = inlined_call_operand.vmem [shape: bf16[32,128], index: 0, kind: input, shape index: {}]   ;;  %s1301_s1 = inlined_call_operand.vmem [shape: bf16[128,256], index: 1, kind: input, shape index: {}]   ;;  %s1302_s2 = inlined_call_operand.vmem [shape: f32[1,256], index: 2, kind: input, shape index: {}]   ;;  %s1303_s3 = inlined_call_operand.vmem [shape: bf16[256,128], index: 3, kind: input, shape index: {}]   ;;  %s1304_s4 = inlined_call_operand.vmem [shape: f32[1,128], index: 4, kind: input, shape index: {}]   ;;  %s1305_s5 = inlined_call_operand.hbm [shape: f32[32,128], index: 5, kind: output, shape index: {}]  }
   0x1   :  { %12 = vsyncpa [#allocation3 + $0x1], 0  ;;  %s1026_s18 = smov 0   ;;  %s1028_s19 = smov 0  }
   0x2   :  { %s1030_s20 = smov 0   ;;  %s1032_s21 = smov 0  }
   0x3 LB: > { %s1047_s22 = sadd.s32 4294967295, %s992_s21   ;;  %s694_s23 = sadd.s32 4294967294, %s992_s21   ;;  %s992_s21 = sphi %s1032_s21, %s1311_s21   ;;  %s988_s20 = sphi %s1030_s20, %s1310_s20   ;;  %s984_s19 = sphi %s1028_s19, %s1309_s19   ;;  %s980_s18 = sphi %s1026_s18, %s1308_s18  }
   0x4   : > { %s1051_s24 = sadd.s32 1, %s992_s21   ;;  %s135_s25 = sadd.s32 1, %s988_s20 }
   0x5   : > { %s132_s26 = ssub.s32 %s992_s21, %s1051_s24  ;;  %p145_p0 = scmp.ne.s32.totalorder %s988_s20, %s984_s19 }
   0x6   : > { %p133_p1 = scmp.eq.s32.totalorder %s132_s26, 0  ;;  %p146_p2 = scmp.eq.s32.totalorder %s1047_s22, 1 }
   0x7   : > { %p151_p3 = scmp.ne.s32.totalorder %s984_s19, %s980_s18  ;;  %p152_p4 = scmp.eq.s32.totalorder %s694_s23, 1 }
   0x8   : > { %s1062_s27 = scalar_select %p133_p1, %s988_s20, %s135_s25  }
   0x9   : > { %p1064_p5 = por %p146_p2, %p145_p0  ;;  %p1068_p6 = por %p152_p4, %p151_p3 }
   0xa   : > { %p697_p7 = scmp.ge.s32.totalorder %s992_s21, 1  ;;  %p191_p8 = scmp.lt.s32.totalorder %s992_s21, 3 }
   0xc   : > { %p192_p9 = pnand %p697_p7, %p191_p8 }
   0xd   : > { %s699_s13 = sshll.u32 (!%p192_p9), %s1047_s22, 1  ;;  %s216_s12 = sand.u32 (!%p192_p9), 1, %s984_s19  }
   0xe   : > { %195 = sbr.rel (%p192_p9) target bundleno = 380 (0x17c), region = 40  ;;  %p220_p10 = scmp.lt.s32.totalorder (!%p192_p9), %s699_s13, 3 }
   0xf   : > { %s698_s16 = sshll.u32 (!%p192_p9), %s216_s12, 4  ;;  %s871_s17 = sshll.u32 (!%p192_p9), %s1047_s22, 4 }
  0x10   : > { %s218_s23 = scalar_lea.vmem (!%p192_p9), [#allocation2], %s698_s16  ;;  %s628_s30 = scalar_lea.hbm (!%p192_p9), %s1305_s5, %s871_s17 }
  0x11   : > { %s629_s6 = sshll.u32 (!%p192_p9), %s218_s23, 4  ;;  %s631_s7 = sshll.u32 (!%p192_p9), %s628_s30, 4  ;;  %s630_s6 = int_to_ptr.vmem [resolvable:$true] %s629_s6  ;;  %s632_s7 = int_to_ptr.hbm [resolvable:$true] %s631_s7 }
  0x12   : > { %s617_s8 = scalar_lea.sflag (!%p192_p9), [#allocation3], %s216_s12  ;;  %s944_s9 = sshra.s32 (!%p192_p9), %s632_s7, 4  ;;  %s945_s9 = int_to_ptr.hbm [resolvable:$true] %s944_s9 }
  0x13   : > { %v763_v0 = vld [vmem:[%s1301_s1 + $0x70] sm:$0xf]  ;;  %v854_v1 = vld [vmem:[%s1301_s1 + $0x74] sm:$0xf0]  ;;  %v853_v2 = vld [vmem:[%s1301_s1 + $0x74] sm:$0xf]  ;;  %p951_p0 = scmp.lt.s32.totalorder %s945_s9, %s1305_s5 }
  0x14   : > { %v764_v3 = vor.u32 %v854_v1, %v763_v0  ;;  %v765_v4 = vld [vmem:[%s1301_s1 + $0x78] sm:$0xf0]  ;;  %v755_v5 = vld [vmem:[%s1301_s1 + $0x60] sm:$0xf]  ;;  %v852_v6 = vld [vmem:[%s1301_s1 + $0x64] sm:$0xf0] }
  0x15   : > { %v768_v7 = vor.u32 %v853_v2, %v765_v4  ;;  %v851_v8 = vld [vmem:[%s1301_s1 + $0x64] sm:$0xf]  ;;  %v757_v9 = vld [vmem:[%s1301_s1 + $0x68] sm:$0xf0]  ;;  %v756_v10 = vor.u32 %v852_v6, %v755_v5  ;;  %v747_v12 = vld [vmem:[%s1301_s1 + $0x50] sm:$0xf] }
  0x16   : > { %336 = vmatpush.bf16.msra.mxu0 %v764_v3  ;;  %v760_v11 = vor.u32 %v851_v8, %v757_v9  ;;  %v850_v13 = vld [vmem:[%s1301_s1 + $0x54] sm:$0xf0]  ;;  %v849_v14 = vld [vmem:[%s1301_s1 + $0x54] sm:$0xf]  ;;  %v749_v15 = vld [vmem:[%s1301_s1 + $0x58] sm:$0xf0] }
  0x17   : > { %350 = vmatpush.bf16.msra.mxu1 %v768_v7  ;;  %v748_v16 = vor.u32 %v850_v13, %v747_v12  ;;  %v752_v17 = vor.u32 %v849_v14, %v749_v15  ;;  %v739_v18 = vld [vmem:[%s1301_s1 + $0x40] sm:$0xf]  ;;  %v848_v19 = vld [vmem:[%s1301_s1 + $0x44] sm:$0xf0]  ;;  %v847_v20 = vld [vmem:[%s1301_s1 + $0x44] sm:$0xf] }
  0x18   : > { %v741_v21 = vld [vmem:[%s1301_s1 + $0x48] sm:$0xf0]  ;;  %v740_v22 = vor.u32 %v848_v19, %v739_v18  ;;  %v731_v24 = vld [vmem:[%s1301_s1 + $0x30] sm:$0xf]  ;;  %v846_v25 = vld [vmem:[%s1301_s1 + $0x34] sm:$0xf0] }
  0x19   : > { %v744_v23 = vor.u32 %v847_v20, %v741_v21  ;;  %v845_v26 = vld [vmem:[%s1301_s1 + $0x34] sm:$0xf]  ;;  %v733_v27 = vld [vmem:[%s1301_s1 + $0x38] sm:$0xf0]  ;;  %v732_v28 = vor.u32 %v846_v25, %v731_v24  ;;  %v723_v30 = vld [vmem:[%s1301_s1 + $0x20] sm:$0xf] }
  0x1a   : > { %337 = vmatpush.bf16.msra.mxu0 %v756_v10  ;;  %v736_v29 = vor.u32 %v845_v26, %v733_v27  ;;  %v844_v31 = vld [vmem:[%s1301_s1 + $0x24] sm:$0xf0]  ;;  %v843_v32 = vld [vmem:[%s1301_s1 + $0x24] sm:$0xf]  ;;  %v725_v33 = vld [vmem:[%s1301_s1 + $0x28] sm:$0xf0] }
  0x1b   : > { %351 = vmatpush.bf16.msra.mxu1 %v760_v11  ;;  %v724_v34 = vor.u32 %v844_v31, %v723_v30  ;;  %v728_v35 = vor.u32 %v843_v32, %v725_v33  ;;  %v715_v36 = vld [vmem:[%s1301_s1 + $0x10] sm:$0xf]  ;;  %v842_v37 = vld [vmem:[%s1301_s1 + $0x14] sm:$0xf0]  ;;  %s1313_s13 = smov (!%p220_p10, %s699_s13), 3  ;;  %v860_v53 = vld [vmem:[%s1303_s3 + $0x28] sm:$0xff] }
  0x1c   : > { %v841_v38 = vld [vmem:[%s1301_s1 + $0x14] sm:$0xf]  ;;  %v717_v39 = vld [vmem:[%s1301_s1 + $0x18] sm:$0xf0]  ;;  %v716_v40 = vor.u32 %v842_v37, %v715_v36  ;;  %v707_v42 = vld [vmem:[%s1301_s1] sm:$0xf] }
  0x1d   : > { %v720_v41 = vor.u32 %v841_v38, %v717_v39  ;;  %v840_v43 = vld [vmem:[%s1301_s1 + $0x4] sm:$0xf0]  ;;  %s700_s25 = sshll.u32 %s1313_s13, 2  ;;  %v839_v44 = vld [vmem:[%s1301_s1 + $0x4] sm:$0xf]  ;;  %v862_v49 = vld [vmem:[%s1303_s3 + $0x38] sm:$0xff] }
  0x1e   : > { %338 = vmatpush.bf16.msra.mxu0 %v748_v16  ;;  %v709_v45 = vld [vmem:[%s1301_s1 + $0x8] sm:$0xf0]  ;;  %v708_v46 = vor.u32 %v840_v43, %v707_v42  ;;  %s223_s10 = scalar_lea.vmem %s1300_s0, %s700_s25  ;;  %v870_v50 = vld [vmem:[%s1303_s3 + $0x78] sm:$0xff]  ;;  %586 = vmatpush.bf16.msra.mxu2 %v862_v49  ;;  %v861_v51 = vld [vmem:[%s1303_s3 + $0x30] sm:$0xff]  ;;  %s946_s22 = scalar_lea.hbm %s945_s9, 16 }
  0x1f   : > { %352 = vmatpush.bf16.msra.mxu1 %v752_v17  ;;  %v712_v47 = vor.u32 %v839_v44, %v709_v45  ;;  %v838_v48 = vld [vmem:[%s223_s10] sm:$0xff]  ;;  %600 = vmatpush.bf16.msra.mxu3 %v870_v50  ;;  %v869_v52 = vld [vmem:[%s1303_s3 + $0x70] sm:$0xff]  ;;  %v868_v54 = vld [vmem:[%s1303_s3 + $0x68] sm:$0xff]  ;;  %p947_p11 = scmp.ne.s32.totalorder %s945_s9, %s946_s22  ;;  %s950_s11 = scalar_lea.hbm %s1305_s5, 32 }
  0x20   : > { %v244_v55 = vld [vmem:[%s1302_s2] sm:$0x3]  ;;  %v858_v61 = vld [vmem:[%s1303_s3 + $0x18] sm:$0xff]  ;;  %v857_v3 = vld [vmem:[%s1303_s3 + $0x10] sm:$0xff]  ;;  %p952_p1 = scmp.lt.s32.totalorder %s950_s11, %s946_s22 }
  0x21   : > { %v859_v56 = vld [vmem:[%s1303_s3 + $0x20] sm:$0xff]  ;;  %v246_v58 = vperm.slane %v244_v55, 0  ;;  %v247_v59 = vperm.slane %v244_v55, 1  ;;  %v866_v62 = vld [vmem:[%s1303_s3 + $0x58] sm:$0xff]  ;;  %v865_v4 = vld [vmem:[%s1303_s3 + $0x50] sm:$0xff]  ;;  %p948_p12 = pnand %p947_p11, %p1064_p5 }
  0x22   : > { %339 = vmatpush.bf16.msra.mxu0 %v740_v22  ;;  %587 = vmatpush.bf16.msra.mxu2 %v861_v51  ;;  %v867_v57 = vld [vmem:[%s1303_s3 + $0x60] sm:$0xff]  ;;  %v856_v10 = vld [vmem:[%s1303_s3 + $0x8] sm:$0xff]  ;;  %p953_p2 = por %p952_p1, %p951_p0 }
  0x23   : > { %353 = vmatpush.bf16.msra.mxu1 %v744_v23  ;;  %601 = vmatpush.bf16.msra.mxu3 %v869_v52  ;;  %v864_v11 = vld [vmem:[%s1303_s3 + $0x48] sm:$0xff]  ;;  %v855_v17 = vld [vmem:[%s1303_s3] sm:$0xff]  ;;  %p949_p13 = pneg %p948_p12 }
  0x24   : > { %v863_v18 = vld [vmem:[%s1303_s3 + $0x40] sm:$0xff] }
  0x25   : > { %p954_p3 = pnand %p953_p2, %p949_p13 }
  0x26   : > { %340 = vmatpush.bf16.msra.mxu0 %v732_v28  ;;  %588 = vmatpush.bf16.msra.mxu2 %v860_v53 }
  0x27   : > { %354 = vmatpush.bf16.msra.mxu1 %v736_v29  ;;  %602 = vmatpush.bf16.msra.mxu3 %v868_v54 }
  0x2a   : > { %341 = vmatpush.bf16.msra.mxu0 %v724_v34  ;;  %589 = vmatpush.bf16.msra.mxu2 %v859_v56 }
  0x2b   : > { %355 = vmatpush.bf16.msra.mxu1 %v728_v35  ;;  %603 = vmatpush.bf16.msra.mxu3 %v867_v57 }
  0x2e   : > { %342 = vmatpush.bf16.msra.mxu0 %v716_v40  ;;  %590 = vmatpush.bf16.msra.mxu2 %v858_v61 }
  0x2f   : > { %356 = vmatpush.bf16.msra.mxu1 %v720_v41  ;;  %604 = vmatpush.bf16.msra.mxu3 %v866_v62 }
  0x32   : > { %343 = vmatpush.bf16.msra.mxu0 %v708_v46  ;;  %591 = vmatpush.bf16.msra.mxu2 %v857_v3 }
  0x33   : > { %357 = vmatpush.bf16.msra.mxu1 %v712_v47  ;;  %605 = vmatpush.bf16.msra.mxu3 %v865_v4 }
  0x35   : > { %344 = vmatmul.bf16.vlgmr.msra.gmra.mxu0 %v838_v48 }
  0x36   : > { %358 = vmatmul.bf16.vlgmr.msra.gmra.mxu1 %v838_v48  ;;  %592 = vmatpush.bf16.msra.mxu2 %v856_v10 }
  0x37   : > { %606 = vmatpush.bf16.msra.mxu3 %v864_v11 }
  0x3a   : > { %593 = vmatpush.bf16.msra.mxu2 %v855_v17 }
  0x3b   : > { %607 = vmatpush.bf16.msra.mxu3 %v863_v18 }
  0xb2   : > { %v345_v60 = vpop.f32.mrf.mxu0 }
  0xb3   : > { %v1207_v63 = vadd.f32 %v345_v60, %v246_v58  ;;  %v359_v0 = vpop.f32.mrf.mxu1 }
  0xb4   : > { %v1209_v1 = vadd.f32 %v359_v0, %v247_v59 }
  0xb5   : > { %v364_v2 = vand.u32 2147483647, %v1207_v63  ;;  %v416_v25 = vmul.f32 -0.5, %v1207_v63 }
  0xb6   : > { %v365_v5 = vand.u32 2147483647, %v1209_v1  ;;  %v417_v27 = vmul.f32 -0.5, %v1209_v1 }
  0xb7   : > { %v368_v6 = vmul.f32 0.23164189, %v364_v2  ;;  %v420_v31 = vmul.f32 %v416_v25, %v1207_v63 }
  0xb8   : > { %v369_v7 = vmul.f32 0.23164189, %v365_v5  ;;  %v421_v33 = vmul.f32 %v417_v27, %v1209_v1 }
  0xb9   : > { %v372_v8 = vadd.f32 1.0, %v368_v6  ;;  %v424_v38 = vmul.f32 1.442695, %v420_v31 }
  0xba   : > { %v347_v9 = vpop.f32.mrf.mxu0  ;;  %v373_v12 = vadd.f32 1.0, %v369_v7  ;;  %v426_v42 = vmul.f32 1.442695, %v421_v33 }
  0xbb   : > { %v1229_v13 = vadd.f32 %v347_v9, %v246_v58  ;;  %v361_v14 = vpop.f32.mrf.mxu1  ;;  %914 = vrcp.f32 %v372_v8 }
  0xbc   : > { %v1231_v15 = vadd.f32 %v361_v14, %v247_v59  ;;  %916 = vrcp.f32 %v373_v12 }
  0xbd   : > { %v366_v16 = vand.u32 2147483647, %v1229_v13  ;;  %v418_v39 = vmul.f32 -0.5, %v1229_v13 }
  0xbe   : > { %v367_v19 = vand.u32 2147483647, %v1231_v15  ;;  %v419_v43 = vmul.f32 -0.5, %v1231_v15 }
  0xbf   : > { %v370_v20 = vmul.f32 0.23164189, %v366_v16  ;;  %v422_v50 = vmul.f32 %v418_v39, %v1229_v13 }
  0xc0   : > { %v371_v21 = vmul.f32 0.23164189, %v367_v19  ;;  %v423_v53 = vmul.f32 %v419_v43, %v1231_v15 }
  0xc1   : > { %v374_v22 = vadd.f32 1.0, %v370_v20  ;;  %v915_v24 = vpop.eup %914  ;;  %v428_v60 = vmul.f32 1.442695, %v422_v50 }
  0xc2   : > { %v375_v23 = vadd.f32 1.0, %v371_v21  ;;  %v917_v26 = vpop.eup %916  ;;  %v380_v28 = vmul.f32 1.0614054, %v915_v24  ;;  %v430_v0 = vmul.f32 1.442695, %v423_v53 }
  0xc3   : > { %918 = vrcp.f32 %v374_v22  ;;  %v381_v29 = vmul.f32 1.0614054, %v917_v26 }
  0xc4   : > { %v384_v30 = vadd.f32 -1.4531521, %v380_v28  ;;  %920 = vrcp.f32 %v375_v23 }
  0xc5   : > { %v385_v32 = vadd.f32 -1.4531521, %v381_v29  ;;  %922 = vpow2.f32 %v424_v38 }
  0xc6   : > { %v388_v34 = vmul.f32 %v915_v24, %v384_v30  ;;  %924 = vpow2.f32 %v426_v42 }
  0xc7   : > { %v389_v35 = vmul.f32 %v917_v26, %v385_v32  ;;  %926 = vpow2.f32 %v428_v60 }
  0xc8   : > { %v392_v36 = vadd.f32 1.4214138, %v388_v34  ;;  %928 = vpow2.f32 %v430_v0 }
  0xc9   : > { %v919_v37 = vpop.eup %918  ;;  %v393_v40 = vadd.f32 1.4214138, %v389_v35 }
  0xca   : > { %v921_v41 = vpop.eup %920  ;;  %v382_v44 = vmul.f32 1.0614054, %v919_v37  ;;  %v396_v45 = vmul.f32 %v915_v24, %v392_v36 }
  0xcb   : > { %v383_v46 = vmul.f32 1.0614054, %v921_v41  ;;  %v397_v47 = vmul.f32 %v917_v26, %v393_v40  ;;  %v923_v6 = vpop.eup %922 }
  0xcc   : > { %v386_v48 = vadd.f32 -1.4531521, %v382_v44  ;;  %v400_v49 = vadd.f32 -0.28449672, %v396_v45  ;;  %v925_v9 = vpop.eup %924 }
  0xcd   : > { %v387_v51 = vadd.f32 -1.4531521, %v383_v46  ;;  %v401_v52 = vadd.f32 -0.28449672, %v397_v47  ;;  %v927_v27 = vpop.eup %926 }
  0xce   : > { %v390_v54 = vmul.f32 %v919_v37, %v386_v48  ;;  %v404_v55 = vmul.f32 %v915_v24, %v400_v49 }
  0xcf   : > { %v391_v56 = vmul.f32 %v921_v41, %v387_v51  ;;  %v405_v57 = vmul.f32 %v917_v26, %v401_v52 }
  0xd0   : > { %v394_v58 = vadd.f32 1.4214138, %v390_v54  ;;  %v408_v59 = vadd.f32 0.2548296, %v404_v55 }
  0xd1   : > { %v395_v61 = vadd.f32 1.4214138, %v391_v56  ;;  %v409_v62 = vadd.f32 0.2548296, %v405_v57 }
  0xd2   : > { %v398_v3 = vmul.f32 %v919_v37, %v394_v58  ;;  %v412_v4 = vmul.f32 %v915_v24, %v408_v59  ;;  %v929_v24 = vpop.eup %928 }
  0xd3   : > { %v399_v7 = vmul.f32 %v921_v41, %v395_v61  ;;  %v413_v8 = vmul.f32 %v917_v26, %v409_v62 }
  0xd4   : > { %v402_v10 = vadd.f32 -0.28449672, %v398_v3  ;;  %v432_v11 = vmul.f32 %v923_v6, %v412_v4 }
  0xd5   : > { %v403_v12 = vadd.f32 -0.28449672, %v399_v7  ;;  %v433_v14 = vmul.f32 %v925_v9, %v413_v8 }
  0xd6   : > { %v406_v17 = vmul.f32 %v919_v37, %v402_v10  ;;  %v436_v21 = vsub.f32 1.0, %v432_v11 }
  0xd7   : > { %v407_v18 = vmul.f32 %v921_v41, %v403_v12  ;;  %v437_v23 = vsub.f32 1.0, %v433_v14 }
  0xd8   : > { %v410_v20 = vadd.f32 0.2548296, %v406_v17  ;;  %v440_v26 = vmul.f32 %v436_v21, %v364_v2 }
  0xd9   : > { %v411_v22 = vadd.f32 0.2548296, %v407_v18  ;;  %v441_v31 = vmul.f32 %v437_v23, %v365_v5 }
  0xda   : > { %v414_v25 = vmul.f32 %v919_v37, %v410_v20  ;;  %v444_v35 = vadd.f32 %v440_v26, %v1207_v63  ;;  %v913_v63 = vld [vmem:[%s1304_s4] ss:$0 sm:$0xff] }
  0xdb   : > { %v415_v28 = vmul.f32 %v921_v41, %v411_v22  ;;  %v445_v37 = vadd.f32 %v441_v31, %v1209_v1 }
  0xdc   : > { %v434_v29 = vmul.f32 %v927_v27, %v414_v25  ;;  %v448_v39 = vmul.f32 0.5, %v444_v35 }
  0xdd   : > { %v435_v30 = vmul.f32 %v929_v24, %v415_v28  ;;  %v449_v40 = vmul.f32 0.5, %v445_v37 }
  0xde   : > { %v438_v32 = vsub.f32 1.0, %v434_v29 }
  0xdf   : > { %v439_v33 = vsub.f32 1.0, %v435_v30 }
  0xe0   : > { %v442_v34 = vmul.f32 %v438_v32, %v366_v16 }
  0xe1   : > { %v443_v36 = vmul.f32 %v439_v33, %v367_v19 }
  0xe2   : > { %v446_v38 = vadd.f32 %v442_v34, %v1229_v13 }
  0xe3   : > { %v447_v2 = vadd.f32 %v443_v36, %v1231_v15 }
  0xe4   : > { %v450_v5 = vmul.f32 0.5, %v446_v38 }
  0xe5   : > { %v451_v41 = vmul.f32 0.5, %v447_v2 }
  0xe6   : > { %v452_v42 = vpack.c.bf16 %v450_v5, %v448_v39 }
  0xe7   : > { %v453_v43 = vpack.c.bf16 %v451_v41, %v449_v40 }
  0xe8   : > { %594 = vmatmul.bf16.vlgmr.msra.gmra.mxu2 %v452_v42 }
  0xe9   : > { %608 = vmatmul.bf16.vlgmr.msra.gmra.mxu3 %v453_v43 }
 0x16b   : > { %v595_v1 = vpop.f32.mrf.mxu2 }
 0x16c   : > { %v596_v16 = vadd.f32 %v913_v63, %v595_v1  ;;  %v609_v13 = vpop.f32.mrf.mxu3 }
 0x16e   : > { %v610_v19 = vadd.f32 %v609_v13, %v596_v16 }
 0x170   : > { %614 = vst [vmem:[%s218_s23] sm:$0xff] %v610_v19 }
 0x173   : > { %v597_v15 = vpop.f32.mrf.mxu2 }
 0x174   : > { %v598_v44 = vadd.f32 %v913_v63, %v597_v15  ;;  %v611_v45 = vpop.f32.mrf.mxu3 }
 0x176   : > { %v612_v46 = vadd.f32 %v611_v45, %v598_v44 }
 0x178   : > { %615 = vst [vmem:[%s218_s23 + $0x8] sm:$0xff] %v612_v46 }
 0x179   : > { %957 = shalt.err (!%p954_p3)
}
 0x17a   : > { %s994_s12 = smov 128   ;;  %s995_s16 = smov 8  }
 0x17b   : > { %872 = dma.vmem_to_hbm [thread:$0]  (%p1064_p5), %s630_s6, 256, %s632_s7, %s617_s8, %s994_s12, %s994_s12, %s995_s16  }
 0x17c PF: > { %p878_p4 = scmp.ge.s32.totalorder %s992_s21, 2  ;;  %s646_s17 = sand.u32 1, %s980_s18  }
 0x17d   : > { %s647_s23 = scalar_lea.sflag [#allocation3], %s646_s17 }
 0x17e   : > { %p875_p7 = pnand %p878_p4, %p1068_p6 }
 0x180   : > { %p876_p8 = pneg %p875_p7 }
 0x182   : > { %975 = dma.done.wait (%p876_p8), %s647_s23, 256  }
 0x183   : > { %977 = vsyncadd (%p876_p8), %s647_s23, 4294967040  ;;  %p15_p9 = scmp.ge.s32.totalorder %s1051_s24, 4   ;;  %s1308_s18 = smov %s984_s19 }
 0x184   : > { %s1309_s19 = smov %s988_s20  ;;  %s1310_s20 = smov %s1062_s27 }
 0x185   : > { %s1311_s21 = smov %s1051_s24  ;;  %17 = sbr.rel (!%p15_p9) target bundleno = 3 (0x3), region = 75 }
 0x18a   :  { %653 = vsyncpa [#allocation3], 1 }
 0x18b   :  { %655 = vsyncpa [#allocation3 + $0x1], 1 }

// kernel: feed_forward_block.1
= control target key start
LH: loop header
LB: loop body
LE: loop exit
PB: predicated region body
PF: predicated region fallthrough
CT: control target
= control target key end

     0   :  { %10 = vsyncpa [#allocation3], 0  ;;  %s1300_s0 = inlined_call_operand.vmem [shape: bf16[32,128], index: 0, kind: input, shape index: {}]   ;;  %s1301_s1 = inlined_call_operand.vmem [shape: bf16[128,256], index: 1, kind: input, shape index: {}]   ;;  %s1302_s2 = inlined_call_operand.vmem [shape: f32[1,256], index: 2, kind: input, shape index: {}]   ;;  %s1303_s3 = inlined_call_operand.vmem [shape: bf16[256,128], index: 3, kind: input, shape index: {}]   ;;  %s1304_s4 = inlined_call_operand.vmem [shape: f32[1,128], index: 4, kind: input, shape index: {}]   ;;  %s1305_s5 = inlined_call_operand.hbm [shape: f32[32,128], index: 5, kind: output, shape index: {}]  }
   0x1   :  { %12 = vsyncpa [#allocation3 + $0x1], 0  ;;  %s1026_s18 = smov 0   ;;  %s1028_s19 = smov 0  }
   0x2   :  { %s1030_s20 = smov 0   ;;  %s1032_s21 = smov 0  }
   0x3 LB: > { %s1047_s22 = sadd.s32 4294967295, %s992_s21   ;;  %s694_s23 = sadd.s32 4294967294, %s992_s21   ;;  %s992_s21 = sphi %s1032_s21, %s1311_s21   ;;  %s988_s20 = sphi %s1030_s20, %s1310_s20   ;;  %s984_s19 = sphi %s1028_s19, %s1309_s19   ;;  %s980_s18 = sphi %s1026_s18, %s1308_s18  }
   0x4   : > { %s1051_s24 = sadd.s32 1, %s992_s21   ;;  %s135_s25 = sadd.s32 1, %s988_s20 }
   0x5   : > { %s132_s26 = ssub.s32 %s992_s21, %s1051_s24  ;;  %p145_p0 = scmp.ne.s32.totalorder %s988_s20, %s984_s19 }
   0x6   : > { %p133_p1 = scmp.eq.s32.totalorder %s132_s26, 0  ;;  %p146_p2 = scmp.eq.s32.totalorder %s1047_s22, 1 }
   0x7   : > { %p151_p3 = scmp.ne.s32.totalorder %s984_s19, %s980_s18  ;;  %p152_p4 = scmp.eq.s32.totalorder %s694_s23, 1 }
   0x8   : > { %s1062_s27 = scalar_select %p133_p1, %s988_s20, %s135_s25  }
   0x9   : > { %p1064_p5 = por %p146_p2, %p145_p0  ;;  %p1068_p6 = por %p152_p4, %p151_p3 }
   0xa   : > { %p697_p7 = scmp.ge.s32.totalorder %s992_s21, 1  ;;  %p191_p8 = scmp.lt.s32.totalorder %s992_s21, 3 }
   0xc   : > { %p192_p9 = pnand %p697_p7, %p191_p8 }
   0xd   : > { %s699_s13 = sshll.u32 (!%p192_p9), %s1047_s22, 1  ;;  %s216_s12 = sand.u32 (!%p192_p9), 1, %s984_s19  }
   0xe   : > { %195 = sbr.rel (%p192_p9) target bundleno = 380 (0x17c), region = 40  ;;  %p220_p10 = scmp.lt.s32.totalorder (!%p192_p9), %s699_s13, 3 }
   0xf   : > { %s698_s16 = sshll.u32 (!%p192_p9), %s216_s12, 4  ;;  %s871_s17 = sshll.u32 (!%p192_p9), %s1047_s22, 4 }
  0x10   : > { %s218_s23 = scalar_lea.vmem (!%p192_p9), [#allocation2], %s698_s16  ;;  %s628_s30 = scalar_lea.hbm (!%p192_p9), %s1305_s5, %s871_s17 }
  0x11   : > { %s629_s6 = sshll.u32 (!%p192_p9), %s218_s23, 4  ;;  %s631_s7 = sshll.u32 (!%p192_p9), %s628_s30, 4  ;;  %s630_s6 = int_to_ptr.vmem [resolvable:$true] %s629_s6  ;;  %s632_s7 = int_to_ptr.hbm [resolvable:$true] %s631_s7 }
  0x12   : > { %s617_s8 = scalar_lea.sflag (!%p192_p9), [#allocation3], %s216_s12  ;;  %s944_s9 = sshra.s32 (!%p192_p9), %s632_s7, 4  ;;  %s945_s9 = int_to_ptr.hbm [resolvable:$true] %s944_s9 }
  0x13   : > { %v763_v0 = vld [vmem:[%s1301_s1 + $0x70] sm:$0xf]  ;;  %v854_v1 = vld [vmem:[%s1301_s1 + $0x74] sm:$0xf0]  ;;  %v853_v2 = vld [vmem:[%s1301_s1 + $0x74] sm:$0xf]  ;;  %p951_p0 = scmp.lt.s32.totalorder %s945_s9, %s1305_s5 }
  0x14   : > { %v764_v3 = vor.u32 %v854_v1, %v763_v0  ;;  %v765_v4 = vld [vmem:[%s1301_s1 + $0x78] sm:$0xf0]  ;;  %v755_v5 = vld [vmem:[%s1301_s1 + $0x60] sm:$0xf]  ;;  %v852_v6 = vld [vmem:[%s1301_s1 + $0x64] sm:$0xf0] }
  0x15   : > { %v768_v7 = vor.u32 %v853_v2, %v765_v4  ;;  %v851_v8 = vld [vmem:[%s1301_s1 + $0x64] sm:$0xf]  ;;  %v757_v9 = vld [vmem:[%s1301_s1 + $0x68] sm:$0xf0]  ;;  %v756_v10 = vor.u32 %v852_v6, %v755_v5  ;;  %v747_v12 = vld [vmem:[%s1301_s1 + $0x50] sm:$0xf] }
  0x16   : > { %336 = vmatpush.bf16.msra.mxu0 %v764_v3  ;;  %v760_v11 = vor.u32 %v851_v8, %v757_v9  ;;  %v850_v13 = vld [vmem:[%s1301_s1 + $0x54] sm:$0xf0]  ;;  %v849_v14 = vld [vmem:[%s1301_s1 + $0x54] sm:$0xf]  ;;  %v749_v15 = vld [vmem:[%s1301_s1 + $0x58] sm:$0xf0] }
  0x17   : > { %350 = vmatpush.bf16.msra.mxu1 %v768_v7  ;;  %v748_v16 = vor.u32 %v850_v13, %v747_v12  ;;  %v752_v17 = vor.u32 %v849_v14, %v749_v15  ;;  %v739_v18 = vld [vmem:[%s1301_s1 + $0x40] sm:$0xf]  ;;  %v848_v19 = vld [vmem:[%s1301_s1 + $0x44] sm:$0xf0]  ;;  %v847_v20 = vld [vmem:[%s1301_s1 + $0x44] sm:$0xf] }
  0x18   : > { %v741_v21 = vld [vmem:[%s1301_s1 + $0x48] sm:$0xf0]  ;;  %v740_v22 = vor.u32 %v848_v19, %v739_v18  ;;  %v731_v24 = vld [vmem:[%s1301_s1 + $0x30] sm:$0xf]  ;;  %v846_v25 = vld [vmem:[%s1301_s1 + $0x34] sm:$0xf0] }
  0x19   : > { %v744_v23 = vor.u32 %v847_v20, %v741_v21  ;;  %v845_v26 = vld [vmem:[%s1301_s1 + $0x34] sm:$0xf]  ;;  %v733_v27 = vld [vmem:[%s1301_s1 + $0x38] sm:$0xf0]  ;;  %v732_v28 = vor.u32 %v846_v25, %v731_v24  ;;  %v723_v30 = vld [vmem:[%s1301_s1 + $0x20] sm:$0xf] }
  0x1a   : > { %337 = vmatpush.bf16.msra.mxu0 %v756_v10  ;;  %v736_v29 = vor.u32 %v845_v26, %v733_v27  ;;  %v844_v31 = vld [vmem:[%s1301_s1 + $0x24] sm:$0xf0]  ;;  %v843_v32 = vld [vmem:[%s1301_s1 + $0x24] sm:$0xf]  ;;  %v725_v33 = vld [vmem:[%s1301_s1 + $0x28] sm:$0xf0] }
  0x1b   : > { %351 = vmatpush.bf16.msra.mxu1 %v760_v11  ;;  %v724_v34 = vor.u32 %v844_v31, %v723_v30  ;;  %v728_v35 = vor.u32 %v843_v32, %v725_v33  ;;  %v715_v36 = vld [vmem:[%s1301_s1 + $0x10] sm:$0xf]  ;;  %v842_v37 = vld [vmem:[%s1301_s1 + $0x14] sm:$0xf0]  ;;  %s1313_s13 = smov (!%p220_p10, %s699_s13), 3  ;;  %v860_v53 = vld [vmem:[%s1303_s3 + $0x28] sm:$0xff] }
  0x1c   : > { %v841_v38 = vld [vmem:[%s1301_s1 + $0x14] sm:$0xf]  ;;  %v717_v39 = vld [vmem:[%s1301_s1 + $0x18] sm:$0xf0]  ;;  %v716_v40 = vor.u32 %v842_v37, %v715_v36  ;;  %v707_v42 = vld [vmem:[%s1301_s1] sm:$0xf] }
  0x1d   : > { %v720_v41 = vor.u32 %v841_v38, %v717_v39  ;;  %v840_v43 = vld [vmem:[%s1301_s1 + $0x4] sm:$0xf0]  ;;  %s700_s25 = sshll.u32 %s1313_s13, 2  ;;  %v839_v44 = vld [vmem:[%s1301_s1 + $0x4] sm:$0xf]  ;;  %v862_v49 = vld [vmem:[%s1303_s3 + $0x38] sm:$0xff] }
  0x1e   : > { %338 = vmatpush.bf16.msra.mxu0 %v748_v16  ;;  %v709_v45 = vld [vmem:[%s1301_s1 + $0x8] sm:$0xf0]  ;;  %v708_v46 = vor.u32 %v840_v43, %v707_v42  ;;  %s223_s10 = scalar_lea.vmem %s1300_s0, %s700_s25  ;;  %v870_v50 = vld [vmem:[%s1303_s3 + $0x78] sm:$0xff]  ;;  %586 = vmatpush.bf16.msra.mxu2 %v862_v49  ;;  %v861_v51 = vld [vmem:[%s1303_s3 + $0x30] sm:$0xff]  ;;  %s946_s22 = scalar_lea.hbm %s945_s9, 16 }
  0x1f   : > { %352 = vmatpush.bf16.msra.mxu1 %v752_v17  ;;  %v712_v47 = vor.u32 %v839_v44, %v709_v45  ;;  %v838_v48 = vld [vmem:[%s223_s10] sm:$0xff]  ;;  %600 = vmatpush.bf16.msra.mxu3 %v870_v50  ;;  %v869_v52 = vld [vmem:[%s1303_s3 + $0x70] sm:$0xff]  ;;  %v868_v54 = vld [vmem:[%s1303_s3 + $0x68] sm:$0xff]  ;;  %p947_p11 = scmp.ne.s32.totalorder %s945_s9, %s946_s22  ;;  %s950_s11 = scalar_lea.hbm %s1305_s5, 32 }
  0x20   : > { %v244_v55 = vld [vmem:[%s1302_s2] sm:$0x3]  ;;  %v858_v61 = vld [vmem:[%s1303_s3 + $0x18] sm:$0xff]  ;;  %v857_v3 = vld [vmem:[%s1303_s3 + $0x10] sm:$0xff]  ;;  %p952_p1 = scmp.lt.s32.totalorder %s950_s11, %s946_s22 }
  0x21   : > { %v859_v56 = vld [vmem:[%s1303_s3 + $0x20] sm:$0xff]  ;;  %v246_v58 = vperm.slane %v244_v55, 0  ;;  %v247_v59 = vperm.slane %v244_v55, 1  ;;  %v866_v62 = vld [vmem:[%s1303_s3 + $0x58] sm:$0xff]  ;;  %v865_v4 = vld [vmem:[%s1303_s3 + $0x50] sm:$0xff]  ;;  %p948_p12 = pnand %p947_p11, %p1064_p5 }
  0x22   : > { %339 = vmatpush.bf16.msra.mxu0 %v740_v22  ;;  %587 = vmatpush.bf16.msra.mxu2 %v861_v51  ;;  %v867_v57 = vld [vmem:[%s1303_s3 + $0x60] sm:$0xff]  ;;  %v856_v10 = vld [vmem:[%s1303_s3 + $0x8] sm:$0xff]  ;;  %p953_p2 = por %p952_p1, %p951_p0 }
  0x23   : > { %353 = vmatpush.bf16.msra.mxu1 %v744_v23  ;;  %601 = vmatpush.bf16.msra.mxu3 %v869_v52  ;;  %v864_v11 = vld [vmem:[%s1303_s3 + $0x48] sm:$0xff]  ;;  %v855_v17 = vld [vmem:[%s1303_s3] sm:$0xff]  ;;  %p949_p13 = pneg %p948_p12 }
  0x24   : > { %v863_v18 = vld [vmem:[%s1303_s3 + $0x40] sm:$0xff] }
  0x25   : > { %p954_p3 = pnand %p953_p2, %p949_p13 }
  0x26   : > { %340 = vmatpush.bf16.msra.mxu0 %v732_v28  ;;  %588 = vmatpush.bf16.msra.mxu2 %v860_v53 }
  0x27   : > { %354 = vmatpush.bf16.msra.mxu1 %v736_v29  ;;  %602 = vmatpush.bf16.msra.mxu3 %v868_v54 }
  0x2a   : > { %341 = vmatpush.bf16.msra.mxu0 %v724_v34  ;;  %589 = vmatpush.bf16.msra.mxu2 %v859_v56 }
  0x2b   : > { %355 = vmatpush.bf16.msra.mxu1 %v728_v35  ;;  %603 = vmatpush.bf16.msra.mxu3 %v867_v57 }
  0x2e   : > { %342 = vmatpush.bf16.msra.mxu0 %v716_v40  ;;  %590 = vmatpush.bf16.msra.mxu2 %v858_v61 }
  0x2f   : > { %356 = vmatpush.bf16.msra.mxu1 %v720_v41  ;;  %604 = vmatpush.bf16.msra.mxu3 %v866_v62 }
  0x32   : > { %343 = vmatpush.bf16.msra.mxu0 %v708_v46  ;;  %591 = vmatpush.bf16.msra.mxu2 %v857_v3 }
  0x33   : > { %357 = vmatpush.bf16.msra.mxu1 %v712_v47  ;;  %605 = vmatpush.bf16.msra.mxu3 %v865_v4 }
  0x35   : > { %344 = vmatmul.bf16.vlgmr.msra.gmra.mxu0 %v838_v48 }
  0x36   : > { %358 = vmatmul.bf16.vlgmr.msra.gmra.mxu1 %v838_v48  ;;  %592 = vmatpush.bf16.msra.mxu2 %v856_v10 }
  0x37   : > { %606 = vmatpush.bf16.msra.mxu3 %v864_v11 }
  0x3a   : > { %593 = vmatpush.bf16.msra.mxu2 %v855_v17 }
  0x3b   : > { %607 = vmatpush.bf16.msra.mxu3 %v863_v18 }
  0xb2   : > { %v345_v60 = vpop.f32.mrf.mxu0 }
  0xb3   : > { %v1207_v63 = vadd.f32 %v345_v60, %v246_v58  ;;  %v359_v0 = vpop.f32.mrf.mxu1 }
  0xb4   : > { %v1209_v1 = vadd.f32 %v359_v0, %v247_v59 }
  0xb5   : > { %v364_v2 = vand.u32 2147483647, %v1207_v63  ;;  %v416_v25 = vmul.f32 -0.5, %v1207_v63 }
  0xb6   : > { %v365_v5 = vand.u32 2147483647, %v1209_v1  ;;  %v417_v27 = vmul.f32 -0.5, %v1209_v1 }
  0xb7   : > { %v368_v6 = vmul.f32 0.23164189, %v364_v2  ;;  %v420_v31 = vmul.f32 %v416_v25, %v1207_v63 }
  0xb8   : > { %v369_v7 = vmul.f32 0.23164189, %v365_v5  ;;  %v421_v33 = vmul.f32 %v417_v27, %v1209_v1 }
  0xb9   : > { %v372_v8 = vadd.f32 1.0, %v368_v6  ;;  %v424_v38 = vmul.f32 1.442695, %v420_v31 }
  0xba   : > { %v347_v9 = vpop.f32.mrf.mxu0  ;;  %v373_v12 = vadd.f32 1.0, %v369_v7  ;;  %v426_v42 = vmul.f32 1.442695, %v421_v33 }
  0xbb   : > { %v1229_v13 = vadd.f32 %v347_v9, %v246_v58  ;;  %v361_v14 = vpop.f32.mrf.mxu1  ;;  %914 = vrcp.f32 %v372_v8 }
  0xbc   : > { %v1231_v15 = vadd.f32 %v361_v14, %v247_v59  ;;  %916 = vrcp.f32 %v373_v12 }
  0xbd   : > { %v366_v16 = vand.u32 2147483647, %v1229_v13  ;;  %v418_v39 = vmul.f32 -0.5, %v1229_v13 }
  0xbe   : > { %v367_v19 = vand.u32 2147483647, %v1231_v15  ;;  %v419_v43 = vmul.f32 -0.5, %v1231_v15 }
  0xbf   : > { %v370_v20 = vmul.f32 0.23164189, %v366_v16  ;;  %v422_v50 = vmul.f32 %v418_v39, %v1229_v13 }
  0xc0   : > { %v371_v21 = vmul.f32 0.23164189, %v367_v19  ;;  %v423_v53 = vmul.f32 %v419_v43, %v1231_v15 }
  0xc1   : > { %v374_v22 = vadd.f32 1.0, %v370_v20  ;;  %v915_v24 = vpop.eup %914  ;;  %v428_v60 = vmul.f32 1.442695, %v422_v50 }
  0xc2   : > { %v375_v23 = vadd.f32 1.0, %v371_v21  ;;  %v917_v26 = vpop.eup %916  ;;  %v380_v28 = vmul.f32 1.0614054, %v915_v24  ;;  %v430_v0 = vmul.f32 1.442695, %v423_v53 }
  0xc3   : > { %918 = vrcp.f32 %v374_v22  ;;  %v381_v29 = vmul.f32 1.0614054, %v917_v26 }
  0xc4   : > { %v384_v30 = vadd.f32 -1.4531521, %v380_v28  ;;  %920 = vrcp.f32 %v375_v23 }
  0xc5   : > { %v385_v32 = vadd.f32 -1.4531521, %v381_v29  ;;  %922 = vpow2.f32 %v424_v38 }
  0xc6   : > { %v388_v34 = vmul.f32 %v915_v24, %v384_v30  ;;  %924 = vpow2.f32 %v426_v42 }
  0xc7   : > { %v389_v35 = vmul.f32 %v917_v26, %v385_v32  ;;  %926 = vpow2.f32 %v428_v60 }
  0xc8   : > { %v392_v36 = vadd.f32 1.4214138, %v388_v34  ;;  %928 = vpow2.f32 %v430_v0 }
  0xc9   : > { %v919_v37 = vpop.eup %918  ;;  %v393_v40 = vadd.f32 1.4214138, %v389_v35 }
  0xca   : > { %v921_v41 = vpop.eup %920  ;;  %v382_v44 = vmul.f32 1.0614054, %v919_v37  ;;  %v396_v45 = vmul.f32 %v915_v24, %v392_v36 }
  0xcb   : > { %v383_v46 = vmul.f32 1.0614054, %v921_v41  ;;  %v397_v47 = vmul.f32 %v917_v26, %v393_v40  ;;  %v923_v6 = vpop.eup %922 }
  0xcc   : > { %v386_v48 = vadd.f32 -1.4531521, %v382_v44  ;;  %v400_v49 = vadd.f32 -0.28449672, %v396_v45  ;;  %v925_v9 = vpop.eup %924 }
  0xcd   : > { %v387_v51 = vadd.f32 -1.4531521, %v383_v46  ;;  %v401_v52 = vadd.f32 -0.28449672, %v397_v47  ;;  %v927_v27 = vpop.eup %926 }
  0xce   : > { %v390_v54 = vmul.f32 %v919_v37, %v386_v48  ;;  %v404_v55 = vmul.f32 %v915_v24, %v400_v49 }
  0xcf   : > { %v391_v56 = vmul.f32 %v921_v41, %v387_v51  ;;  %v405_v57 = vmul.f32 %v917_v26, %v401_v52 }
  0xd0   : > { %v394_v58 = vadd.f32 1.4214138, %v390_v54  ;;  %v408_v59 = vadd.f32 0.2548296, %v404_v55 }
  0xd1   : > { %v395_v61 = vadd.f32 1.4214138, %v391_v56  ;;  %v409_v62 = vadd.f32 0.2548296, %v405_v57 }
  0xd2   : > { %v398_v3 = vmul.f32 %v919_v37, %v394_v58  ;;  %v412_v4 = vmul.f32 %v915_v24, %v408_v59  ;;  %v929_v24 = vpop.eup %928 }
  0xd3   : > { %v399_v7 = vmul.f32 %v921_v41, %v395_v61  ;;  %v413_v8 = vmul.f32 %v917_v26, %v409_v62 }
  0xd4   : > { %v402_v10 = vadd.f32 -0.28449672, %v398_v3  ;;  %v432_v11 = vmul.f32 %v923_v6, %v412_v4 }
  0xd5   : > { %v403_v12 = vadd.f32 -0.28449672, %v399_v7  ;;  %v433_v14 = vmul.f32 %v925_v9, %v413_v8 }
  0xd6   : > { %v406_v17 = vmul.f32 %v919_v37, %v402_v10  ;;  %v436_v21 = vsub.f32 1.0, %v432_v11 }
  0xd7   : > { %v407_v18 = vmul.f32 %v921_v41, %v403_v12  ;;  %v437_v23 = vsub.f32 1.0, %v433_v14 }
  0xd8   : > { %v410_v20 = vadd.f32 0.2548296, %v406_v17  ;;  %v440_v26 = vmul.f32 %v436_v21, %v364_v2 }
  0xd9   : > { %v411_v22 = vadd.f32 0.2548296, %v407_v18  ;;  %v441_v31 = vmul.f32 %v437_v23, %v365_v5 }
  0xda   : > { %v414_v25 = vmul.f32 %v919_v37, %v410_v20  ;;  %v444_v35 = vadd.f32 %v440_v26, %v1207_v63  ;;  %v913_v63 = vld [vmem:[%s1304_s4] ss:$0 sm:$0xff] }
  0xdb   : > { %v415_v28 = vmul.f32 %v921_v41, %v411_v22  ;;  %v445_v37 = vadd.f32 %v441_v31, %v1209_v1 }
  0xdc   : > { %v434_v29 = vmul.f32 %v927_v27, %v414_v25  ;;  %v448_v39 = vmul.f32 0.5, %v444_v35 }
  0xdd   : > { %v435_v30 = vmul.f32 %v929_v24, %v415_v28  ;;  %v449_v40 = vmul.f32 0.5, %v445_v37 }
  0xde   : > { %v438_v32 = vsub.f32 1.0, %v434_v29 }
  0xdf   : > { %v439_v33 = vsub.f32 1.0, %v435_v30 }
  0xe0   : > { %v442_v34 = vmul.f32 %v438_v32, %v366_v16 }
  0xe1   : > { %v443_v36 = vmul.f32 %v439_v33, %v367_v19 }
  0xe2   : > { %v446_v38 = vadd.f32 %v442_v34, %v1229_v13 }
  0xe3   : > { %v447_v2 = vadd.f32 %v443_v36, %v1231_v15 }
  0xe4   : > { %v450_v5 = vmul.f32 0.5, %v446_v38 }
  0xe5   : > { %v451_v41 = vmul.f32 0.5, %v447_v2 }
  0xe6   : > { %v452_v42 = vpack.c.bf16 %v450_v5, %v448_v39 }
  0xe7   : > { %v453_v43 = vpack.c.bf16 %v451_v41, %v449_v40 }
  0xe8   : > { %594 = vmatmul.bf16.vlgmr.msra.gmra.mxu2 %v452_v42 }
  0xe9   : > { %608 = vmatmul.bf16.vlgmr.msra.gmra.mxu3 %v453_v43 }
 0x16b   : > { %v595_v1 = vpop.f32.mrf.mxu2 }
 0x16c   : > { %v596_v16 = vadd.f32 %v913_v63, %v595_v1  ;;  %v609_v13 = vpop.f32.mrf.mxu3 }
 0x16e   : > { %v610_v19 = vadd.f32 %v609_v13, %v596_v16 }
 0x170   : > { %614 = vst [vmem:[%s218_s23] sm:$0xff] %v610_v19 }
 0x173   : > { %v597_v15 = vpop.f32.mrf.mxu2 }
 0x174   : > { %v598_v44 = vadd.f32 %v913_v63, %v597_v15  ;;  %v611_v45 = vpop.f32.mrf.mxu3 }
 0x176   : > { %v612_v46 = vadd.f32 %v611_v45, %v598_v44 }
 0x178   : > { %615 = vst [vmem:[%s218_s23 + $0x8] sm:$0xff] %v612_v46 }
 0x179   : > { %957 = shalt.err (!%p954_p3)
}
 0x17a   : > { %s994_s12 = smov 128   ;;  %s995_s16 = smov 8  }
 0x17b   : > { %872 = dma.vmem_to_hbm [thread:$0]  (%p1064_p5), %s630_s6, 256, %s632_s7, %s617_s8, %s994_s12, %s994_s12, %s995_s16  }
 0x17c PF: > { %p878_p4 = scmp.ge.s32.totalorder %s992_s21, 2  ;;  %s646_s17 = sand.u32 1, %s980_s18  }
 0x17d   : > { %s647_s23 = scalar_lea.sflag [#allocation3], %s646_s17 }
 0x17e   : > { %p875_p7 = pnand %p878_p4, %p1068_p6 }
 0x180   : > { %p876_p8 = pneg %p875_p7 }
 0x182   : > { %975 = dma.done.wait (%p876_p8), %s647_s23, 256  }
 0x183   : > { %977 = vsyncadd (%p876_p8), %s647_s23, 4294967040  ;;  %p15_p9 = scmp.ge.s32.totalorder %s1051_s24, 4   ;;  %s1308_s18 = smov %s984_s19 }
 0x184   : > { %s1309_s19 = smov %s988_s20  ;;  %s1310_s20 = smov %s1062_s27 }
 0x185   : > { %s1311_s21 = smov %s1051_s24  ;;  %17 = sbr.rel (!%p15_p9) target bundleno = 3 (0x3), region = 75 }
 0x18a   :  { %653 = vsyncpa [#allocation3], 1 }
 0x18b   :  { %655 = vsyncpa [#allocation3 + $0x1], 1 }

</bundles_post_ra>
